<compile_context>
chip_gen: v5e
topology: v5e:2x2
jax: 0.10.0
libtpu: 0.0.40
codegen_flags: <defaults>
</compile_context>

<pallas_src>
import jax
import jax.numpy as jnp
from jax.experimental import pallas as pl
from jax.experimental.pallas import tpu as pltpu


def _round_up(x, m):
    return (x + m - 1) // m * m


def _readout_kernel(ids_ref, h_ref, w1_ref, b1_ref, w2_ref, b2_ref, invc_ref,
                    o_ref, acc_ref):
    """sum-pool (in-kernel one-hot matmul) -> mean -> fc1 -> ELU -> fc2 -> log_softmax(dim=0)."""
    k = pl.program_id(0)

    @pl.when(k == 0)
    def _():
        acc_ref[...] = jnp.zeros_like(acc_ref)

    # Build the (G, tile_n) pooling one-hot from the int32 graph ids of this
    # node slab.  0/1 entries are exact in bf16; padded nodes carry id == G and
    # therefore match no graph row.
    ids = ids_ref[...]                                       # (1, tile_n) int32
    num_graphs, tile_n = acc_ref.shape[0], ids.shape[1]
    gidx = jax.lax.broadcasted_iota(jnp.int32, (num_graphs, tile_n), 0)
    onehot = jnp.where(gidx == ids, 1.0, 0.0).astype(h_ref.dtype)

    # Per-graph feature sums, f32 accumulation on the MXU.
    acc_ref[...] += jnp.dot(onehot, h_ref[...],
                            preferred_element_type=jnp.float32)

    @pl.when(k == pl.num_programs(0) - 1)
    def _():
        # Mean = sum * (1/count); 1/count is f32 and never rounded to bf16.
        pooled = acc_ref[...] * invc_ref[...]                # (G, H) f32
        # fc1 + ELU (elementwise path stays f32; only MXU operands are cast).
        y = jnp.dot(pooled.astype(w1_ref.dtype), w1_ref[...],
                    preferred_element_type=jnp.float32) + b1_ref[...]
        y = jnp.where(y > 0.0, y, jnp.exp(jnp.minimum(y, 0.0)) - 1.0)
        # fc2 (class dim zero-padded to a lane-dense 128 width).
        z = jnp.dot(y.astype(w2_ref.dtype), w2_ref[...],
                    preferred_element_type=jnp.float32) + b2_ref[...]
        # log_softmax over dim 0 (the graph/batch dim) -> per column, so the
        # zero-padded class lanes cannot contaminate the real classes.
        m = jnp.max(z, axis=0, keepdims=True)
        zc = z - m
        lse = jnp.log(jnp.sum(jnp.exp(zc), axis=0, keepdims=True))
        o_ref[...] = (zc - lse).astype(o_ref.dtype)


def gated_dgl_readout(h, graph_ids, num_graphs, w1, b1, w2, b2, *,
                      use_bf16=True, max_node_tile=8192,
                      vmem_limit_bytes=32 * 1024 * 1024):
    """AvgPooling(g, h) -> fc1 -> ELU -> fc2 -> log_softmax(dim=0), fused on TPU.

    h:         (num_nodes, n_hidden)  node features after the conv+ReLU stack
    graph_ids: (num_nodes,) int32     graph membership of each node (any order)
    w1, b1:    (n_hidden, n_hidden), (1, n_hidden)    fc1, W stored as (in, out)
    w2, b2:    (n_hidden, n_classes), (1, n_classes)  fc2
    """
    N, Hd = h.shape
    G = int(num_graphs)
    C = w2.shape[1]

    # Lane-dense output: pad classes to a multiple of 128 lanes (unmasked vst).
    # No point padding further to 256 for the v6e MXU: fc2 is a one-shot epilogue.
    C_pad = max(128, _round_up(C, 128))
    w2p = jnp.pad(w2, ((0, 0), (0, C_pad - C)))
    b2p = jnp.pad(b2, ((0, 0), (0, C_pad - C)))

    in_dtype = jnp.bfloat16 if use_bf16 else h.dtype
    itemsize = jnp.dtype(in_dtype).itemsize

    # Node-dim tile: as large as a ~12 MiB double-buffered streaming budget
    # allows (h slab + id slab), capped at max_node_tile; multiple of 128 so
    # both the (tile_n, Hd) h block and the (1, tile_n) id block are aligned.
    # Sized against the explicit 32 MiB scoped VMEM limit -> safe on v5e/v6e/v7x.
    stream_budget = 12 * 1024 * 1024
    per_node_bytes = 2 * (Hd * itemsize + 4)      # double-buffered h + ids
    cap = max(128, (stream_budget // per_node_bytes) // 128 * 128)
    tile_n = min(max(128, (max_node_tile // 128) * 128), cap, _round_up(N, 128))
    N_pad = _round_up(N, tile_n)
    grid = (N_pad // tile_n,)

    # Zero-pad the node dim (zeros add nothing to the pooled sums); padded ids
    # get the out-of-range value G so they match no graph row.
    h_in = jnp.pad(h, ((0, N_pad - N), (0, 0))).astype(in_dtype)
    ids_in = jnp.pad(graph_ids.astype(jnp.int32), (0, N_pad - N),
                     constant_values=G).reshape(1, N_pad)

    # Per-graph 1/count in f32.  Empty graphs clamp to count=1 -> zero pooled
    # row (intentional divergence from DGL, which assumes non-empty graphs).
    counts = jnp.zeros((G,), jnp.float32).at[graph_ids].add(1.0)
    inv_counts = (1.0 / jnp.maximum(counts, 1.0)).reshape(G, 1)

    w1_in = w1.astype(in_dtype)
    w2_in = w2p.astype(in_dtype)
    b1_in = b1.astype(jnp.float32)
    b2_in = b2p.astype(jnp.float32)

    cost = pl.CostEstimate(
        flops=2 * G * (N_pad * Hd + Hd * Hd + Hd * C_pad),
        transcendentals=G * (Hd + 2 * C_pad),
        bytes_accessed=(itemsize * (N_pad * Hd + Hd * Hd + Hd * C_pad)
                        + 4 * N_pad + 4 * (Hd + C_pad + G) + 4 * G * C_pad),
    )

    out = pl.pallas_call(
        _readout_kernel,
        out_shape=jax.ShapeDtypeStruct((G, C_pad), jnp.float32),
        grid_spec=pltpu.PrefetchScalarGridSpec(
            num_scalar_prefetch=0,
            grid=grid,
            in_specs=[
                pl.BlockSpec((1, tile_n), lambda k: (0, k)),     # graph ids
                pl.BlockSpec((tile_n, Hd), lambda k: (k, 0)),    # node features
                pl.BlockSpec((Hd, Hd), lambda k: (0, 0)),        # W1 (resident)
                pl.BlockSpec((1, Hd), lambda k: (0, 0)),         # b1
                pl.BlockSpec((Hd, C_pad), lambda k: (0, 0)),     # W2 (padded)
                pl.BlockSpec((1, C_pad), lambda k: (0, 0)),      # b2 (padded)
                pl.BlockSpec((G, 1), lambda k: (0, 0)),          # 1/count (f32)
            ],
            out_specs=pl.BlockSpec((G, C_pad), lambda k: (0, 0)),
            scratch_shapes=[pltpu.VMEM((G, Hd), jnp.float32)],
        ),
        compiler_params=pltpu.CompilerParams(
            dimension_semantics=("arbitrary",),     # node axis is a reduction
            vmem_limit_bytes=vmem_limit_bytes),
        cost_estimate=cost,
    )(ids_in, h_in, w1_in, b1_in, w2_in, b2_in, inv_counts)

    return out[:, :C]


def _reference(h, graph_ids, num_graphs, w1, b1, w2, b2):
    one_hot = (graph_ids[None, :] == jnp.arange(num_graphs)[:, None])
    one_hot = one_hot.astype(jnp.float32)
    counts = jnp.maximum(one_hot.sum(axis=1, keepdims=True), 1.0)
    pooled = (one_hot @ h) / counts
    y = pooled @ w1 + b1
    y = jnp.where(y > 0.0, y, jnp.exp(jnp.minimum(y, 0.0)) - 1.0)   # ELU
    z = y @ w2 + b2
    return jax.nn.log_softmax(z, axis=0)


def _init_linear(key, fan_in, fan_out):
    # Roughly PyTorch's uniform(-1/sqrt(fan_in), 1/sqrt(fan_in)).
    kw, kb = jax.random.split(key)
    bound = 1.0 / (fan_in ** 0.5)
    w = jax.random.uniform(kw, (fan_in, fan_out), jnp.float32, -bound, bound)
    b = jax.random.uniform(kb, (1, fan_out), jnp.float32, -bound, bound)
    return w, b


if __name__ == "__main__":
    key = jax.random.PRNGKey(0)
    k_h, k1, k2, k_h2, k_id2 = jax.random.split(key, 5)

    n_hidden = 128
    n_classes = 8
    num_graphs = 8

    w1, b1 = _init_linear(k1, n_hidden, n_hidden)
    w2, b2 = _init_linear(k2, n_hidden, n_classes)

    # Case 1: tile-aligned node count (128 nodes, 16 per graph).
    num_nodes = 128
    graph_ids = jnp.repeat(jnp.arange(num_graphs, dtype=jnp.int32),
                           num_nodes // num_graphs)
    # Node features after the GatedDGLConv+ReLU stack (conv not translated).
    h = jnp.maximum(jax.random.normal(k_h, (num_nodes, n_hidden), jnp.float32),
                    0.0)
    ref = _reference(h, graph_ids, num_graphs, w1, b1, w2, b2)

    # f32 operand path: tight check.
    out_f32 = jax.block_until_ready(
        gated_dgl_readout(h, graph_ids, num_graphs, w1, b1, w2, b2,
                          use_bf16=False))
    assert out_f32.shape == (num_graphs, n_classes)
    assert jnp.allclose(out_f32, ref, atol=5e-3, rtol=5e-3)

    # Default bf16 MXU-operand path (f32 sums + f32 1/count): relaxed check.
    out_bf16 = jax.block_until_ready(
        gated_dgl_readout(h, graph_ids, num_graphs, w1, b1, w2, b2))
    assert out_bf16.shape == (num_graphs, n_classes)
    assert jnp.allclose(out_bf16, ref, atol=5e-2, rtol=5e-2)

    # Case 2: ragged node count (exercises node-dim zero padding) + unsorted ids.
    num_nodes2 = 200
    graph_ids2 = jax.random.randint(k_id2, (num_nodes2,), 0, num_graphs,
                                    dtype=jnp.int32)
    h2 = jnp.maximum(jax.random.normal(k_h2, (num_nodes2, n_hidden),
                                       jnp.float32), 0.0)
    ref2 = _reference(h2, graph_ids2, num_graphs, w1, b1, w2, b2)
    out2 = jax.block_until_ready(
        gated_dgl_readout(h2, graph_ids2, num_graphs, w1, b1, w2, b2))
    assert out2.shape == (num_graphs, n_classes)
    assert jnp.allclose(out2, ref2, atol=5e-2, rtol=5e-2)

    print("KERNEL_OK")
</pallas_src>

<mosaic_0001>
module attributes {stable_mosaic.version = 11 : i64} {
  func.func @_readout_kernel(%arg0: i32, %arg1: memref<1x128xi32, #tpu.memory_space<vmem>>, %arg2: memref<128x128xf32, #tpu.memory_space<vmem>>, %arg3: memref<128x128xf32, #tpu.memory_space<vmem>>, %arg4: memref<1x128xf32, #tpu.memory_space<vmem>>, %arg5: memref<128x128xf32, #tpu.memory_space<vmem>>, %arg6: memref<1x128xf32, #tpu.memory_space<vmem>>, %arg7: memref<8x1xf32, #tpu.memory_space<vmem>>, %arg8: memref<8x128xf32, #tpu.memory_space<vmem>>, %arg9: memref<8x128xf32, #tpu.memory_space<vmem>>) attributes {dimension_semantics = [#tpu.dimension_semantics<arbitrary>], iteration_bounds = array<i64: 1>, scalar_prefetch = 0 : i64, scratch_operands = 1 : i64, tpu.core_type = #tpu.core_type<tc>, window_params = [{transform_indices = @transform_0, window_bounds = array<i64: 1, 128>}, {transform_indices = @transform_1, window_bounds = array<i64: 128, 128>}, {pipeline_mode = #tpu.pipeline_mode<synchronous>, transform_indices = @transform_2, window_bounds = array<i64: 128, 128>}, {pipeline_mode = #tpu.pipeline_mode<synchronous>, transform_indices = @transform_3, window_bounds = array<i64: 1, 128>}, {pipeline_mode = #tpu.pipeline_mode<synchronous>, transform_indices = @transform_4, window_bounds = array<i64: 128, 128>}, {pipeline_mode = #tpu.pipeline_mode<synchronous>, transform_indices = @transform_5, window_bounds = array<i64: 1, 128>}, {pipeline_mode = #tpu.pipeline_mode<synchronous>, transform_indices = @transform_6, window_bounds = array<i64: 8, 1>}, {pipeline_mode = #tpu.pipeline_mode<synchronous>, transform_indices = @transform_7, window_bounds = array<i64: 8, 128>}]} {
    %c0_i32 = arith.constant 0 : i32
    %0 = arith.cmpi eq, %arg0, %c0_i32 : i32
    %1 = arith.extui %0 : i1 to i32
    %c0_i32_0 = arith.constant 0 : i32
    %2 = arith.cmpi ne, %1, %c0_i32_0 : i32
    scf.if %2 {
      %cst_12 = arith.constant 0.000000e+00 : f32
      %18 = vector.broadcast %cst_12 : f32 to vector<8x128xf32>
      %c0_13 = arith.constant 0 : index
      %c0_14 = arith.constant 0 : index
      %19 = vector.load %arg9[%c0_13, %c0_14] : memref<8x128xf32, #tpu.memory_space<vmem>>, vector<8x128xf32>
      tpu.vector_store %arg9[%c0_13, %c0_14], %18 {strides = array<i32>} : memref<8x128xf32, #tpu.memory_space<vmem>>, vector<8x128xf32>,
    } else {
    }
    %c0 = arith.constant 0 : index
    %c0_1 = arith.constant 0 : index
    %3 = vector.load %arg1[%c0, %c0_1] : memref<1x128xi32, #tpu.memory_space<vmem>>, vector<1x128xi32>
    %4 = tpu.iota {dimensions = array<i32: 0>} : vector<8x128xi32>
    %5 = vector.broadcast %3 : vector<1x128xi32> to vector<8x128xi32>
    %6 = arith.cmpi eq, %4, %5 : vector<8x128xi32>
    %cst = arith.constant 1.000000e+00 : f32
    %cst_2 = arith.constant 0.000000e+00 : f32
    %7 = vector.broadcast %cst : f32 to vector<8x128xf32>
    %8 = vector.broadcast %cst_2 : f32 to vector<8x128xf32>
    %9 = arith.select %6, %7, %8 : vector<8x128xi1>, vector<8x128xf32>
    %c0_3 = arith.constant 0 : index
    %c0_4 = arith.constant 0 : index
    %10 = vector.load %arg9[%c0_3, %c0_4] : memref<8x128xf32, #tpu.memory_space<vmem>>, vector<8x128xf32>
    %c0_5 = arith.constant 0 : index
    %c0_6 = arith.constant 0 : index
    %11 = vector.load %arg2[%c0_5, %c0_6] : memref<128x128xf32, #tpu.memory_space<vmem>>, vector<128x128xf32>
    %cst_7 = arith.constant dense<0.000000e+00> : vector<8x128xf32>
    %12 = tpu.matmul %9, %11, %cst_7 {dimension_numbers = #tpu.dot_dimension_numbers<[1], [0], [0], [1], [0, 0, 1, 1], [], []>} : vector<8x128xf32>, vector<128x128xf32>, vector<8x128xf32> -> vector<8x128xf32>
    %13 = arith.addf %10, %12 : vector<8x128xf32>
    %c0_8 = arith.constant 0 : index
    %c0_9 = arith.constant 0 : index
    %14 = vector.load %arg9[%c0_8, %c0_9] : memref<8x128xf32, #tpu.memory_space<vmem>>, vector<8x128xf32>
    tpu.vector_store %arg9[%c0_8, %c0_9], %13 {strides = array<i32>} : memref<8x128xf32, #tpu.memory_space<vmem>>, vector<8x128xf32>,
    %c0_i32_10 = arith.constant 0 : i32
    %15 = arith.cmpi eq, %arg0, %c0_i32_10 : i32
    %16 = arith.extui %15 : i1 to i32
    %c0_i32_11 = arith.constant 0 : i32
    %17 = arith.cmpi ne, %16, %c0_i32_11 : i32
    scf.if %17 {
      %c0_12 = arith.constant 0 : index
      %c0_13 = arith.constant 0 : index
      %18 = vector.load %arg9[%c0_12, %c0_13] : memref<8x128xf32, #tpu.memory_space<vmem>>, vector<8x128xf32>
      %c0_14 = arith.constant 0 : index
      %c0_15 = arith.constant 0 : index
      %19 = vector.load %arg7[%c0_14, %c0_15] : memref<8x1xf32, #tpu.memory_space<vmem>>, vector<8x1xf32>
      %20 = vector.broadcast %19 : vector<8x1xf32> to vector<8x128xf32>
      %21 = arith.mulf %18, %20 : vector<8x128xf32>
      %c0_16 = arith.constant 0 : index
      %c0_17 = arith.constant 0 : index
      %22 = vector.load %arg3[%c0_16, %c0_17] : memref<128x128xf32, #tpu.memory_space<vmem>>, vector<128x128xf32>
      %cst_18 = arith.constant dense<0.000000e+00> : vector<8x128xf32>
      %23 = tpu.matmul %21, %22, %cst_18 {dimension_numbers = #tpu.dot_dimension_numbers<[1], [0], [0], [1], [0, 0, 1, 1], [], []>} : vector<8x128xf32>, vector<128x128xf32>, vector<8x128xf32> -> vector<8x128xf32>
      %c0_19 = arith.constant 0 : index
      %c0_20 = arith.constant 0 : index
      %24 = vector.load %arg4[%c0_19, %c0_20] : memref<1x128xf32, #tpu.memory_space<vmem>>, vector<1x128xf32>
      %25 = vector.broadcast %24 : vector<1x128xf32> to vector<8x128xf32>
      %26 = arith.addf %23, %25 : vector<8x128xf32>
      %cst_21 = arith.constant 0.000000e+00 : f32
      %27 = vector.broadcast %cst_21 : f32 to vector<8x128xf32>
      %28 = arith.cmpf ogt, %26, %27 : vector<8x128xf32>
      %cst_22 = arith.constant 0.000000e+00 : f32
      %29 = vector.broadcast %cst_22 : f32 to vector<8x128xf32>
      %30 = arith.minimumf %26, %29 : vector<8x128xf32>
      %31 = math.exp %30 : vector<8x128xf32>
      %cst_23 = arith.constant 1.000000e+00 : f32
      %32 = vector.broadcast %cst_23 : f32 to vector<8x128xf32>
      %33 = arith.subf %31, %32 : vector<8x128xf32>
      %34 = arith.select %28, %26, %33 : vector<8x128xi1>, vector<8x128xf32>
      %c0_24 = arith.constant 0 : index
      %c0_25 = arith.constant 0 : index
      %35 = vector.load %arg5[%c0_24, %c0_25] : memref<128x128xf32, #tpu.memory_space<vmem>>, vector<128x128xf32>
      %cst_26 = arith.constant dense<0.000000e+00> : vector<8x128xf32>
      %36 = tpu.matmul %34, %35, %cst_26 {dimension_numbers = #tpu.dot_dimension_numbers<[1], [0], [0], [1], [0, 0, 1, 1], [], []>} : vector<8x128xf32>, vector<128x128xf32>, vector<8x128xf32> -> vector<8x128xf32>
      %c0_27 = arith.constant 0 : index
      %c0_28 = arith.constant 0 : index
      %37 = vector.load %arg6[%c0_27, %c0_28] : memref<1x128xf32, #tpu.memory_space<vmem>>, vector<1x128xf32>
      %38 = vector.broadcast %37 : vector<1x128xf32> to vector<8x128xf32>
      %39 = arith.addf %36, %38 : vector<8x128xf32>
      %cst_29 = arith.constant dense<0xFF800000> : vector<128xf32>
      %40 = vector.multi_reduction <maximumf>, %39, %cst_29 [0] : vector<8x128xf32> to vector<128xf32>
      %41 = vector.shape_cast %40 : vector<128xf32> to vector<1x128xf32>
      %42 = vector.broadcast %41 : vector<1x128xf32> to vector<8x128xf32>
      %43 = arith.subf %39, %42 : vector<8x128xf32>
      %44 = math.exp %43 : vector<8x128xf32>
      %cst_30 = arith.constant dense<0.000000e+00> : vector<128xf32>
      %45 = vector.multi_reduction <add>, %44, %cst_30 [0] : vector<8x128xf32> to vector<128xf32>
      %46 = vector.shape_cast %45 : vector<128xf32> to vector<1x128xf32>
      %47 = math.log %46 : vector<1x128xf32>
      %48 = vector.broadcast %47 : vector<1x128xf32> to vector<8x128xf32>
      %49 = arith.subf %43, %48 : vector<8x128xf32>
      %c0_31 = arith.constant 0 : index
      %c0_32 = arith.constant 0 : index
      %50 = vector.load %arg8[%c0_31, %c0_32] : memref<8x128xf32, #tpu.memory_space<vmem>>, vector<8x128xf32>
      tpu.vector_store %arg8[%c0_31, %c0_32], %49 {strides = array<i32>} : memref<8x128xf32, #tpu.memory_space<vmem>>, vector<8x128xf32>,
    } else {
    }
    return
  }
  func.func @transform_0(%arg0: i32) -> (i32, i32) {
    %c0_i32 = arith.constant 0 : i32
    %c0_i32_0 = arith.constant 0 : i32
    return %c0_i32, %arg0 : i32, i32
  }
  func.func @transform_1(%arg0: i32) -> (i32, i32) {
    %c0_i32 = arith.constant 0 : i32
    %c0_i32_0 = arith.constant 0 : i32
    return %arg0, %c0_i32 : i32, i32
  }
  func.func @transform_2(%arg0: i32) -> (i32, i32) {
    %c0_i32 = arith.constant 0 : i32
    %c0_i32_0 = arith.constant 0 : i32
    %c0_i32_1 = arith.constant 0 : i32
    return %c0_i32, %c0_i32_0 : i32, i32
  }
  func.func @transform_3(%arg0: i32) -> (i32, i32) {
    %c0_i32 = arith.constant 0 : i32
    %c0_i32_0 = arith.constant 0 : i32
    %c0_i32_1 = arith.constant 0 : i32
    return %c0_i32, %c0_i32_0 : i32, i32
  }
  func.func @transform_4(%arg0: i32) -> (i32, i32) {
    %c0_i32 = arith.constant 0 : i32
    %c0_i32_0 = arith.constant 0 : i32
    %c0_i32_1 = arith.constant 0 : i32
    return %c0_i32, %c0_i32_0 : i32, i32
  }
  func.func @transform_5(%arg0: i32) -> (i32, i32) {
    %c0_i32 = arith.constant 0 : i32
    %c0_i32_0 = arith.constant 0 : i32
    %c0_i32_1 = arith.constant 0 : i32
    return %c0_i32, %c0_i32_0 : i32, i32
  }
  func.func @transform_6(%arg0: i32) -> (i32, i32) {
    %c0_i32 = arith.constant 0 : i32
    %c0_i32_0 = arith.constant 0 : i32
    %c0_i32_1 = arith.constant 0 : i32
    return %c0_i32, %c0_i32_0 : i32, i32
  }
  func.func @transform_7(%arg0: i32) -> (i32, i32) {
    %c0_i32 = arith.constant 0 : i32
    %c0_i32_0 = arith.constant 0 : i32
    %c0_i32_1 = arith.constant 0 : i32
    return %c0_i32, %c0_i32_0 : i32, i32
  }
}

</mosaic_0001>

<bundles_post_ra>
// kernel: tpu_custom_call.1
= control target key start
LH: loop header
LB: loop body
LE: loop exit
PB: predicated region body
PF: predicated region fallthrough
CT: control target
= control target key end

     0   :  { %12 = vsyncpa [#allocation4], 0  ;;  %s452_s0 = inlined_call_operand.vmem [shape: s32[1,128], index: 0, kind: input, shape index: {}]   ;;  %s453_s1 = inlined_call_operand.hbm [shape: f32[128,128], index: 1, kind: input, shape index: {}]   ;;  %s454_s2 = inlined_call_operand.hbm [shape: f32[128,128], index: 2, kind: input, shape index: {}]   ;;  %s455_s3 = inlined_call_operand.vmem [shape: f32[1,128], index: 3, kind: input, shape index: {}]   ;;  %s456_s4 = inlined_call_operand.hbm [shape: f32[128,128], index: 4, kind: input, shape index: {}]   ;;  %s457_s5 = inlined_call_operand.vmem [shape: f32[1,128], index: 5, kind: input, shape index: {}]   ;;  %s458_s6 = inlined_call_operand.vmem [shape: f32[8,1], index: 6, kind: input, shape index: {}]   ;;  %s459_s7 = inlined_call_operand.hbm [shape: f32[8,128], index: 7, kind: output, shape index: {}]  }
   0x1   :  { %13 = vsyncpa [#allocation7], 0 }
   0x2   :  { %14 = vsyncpa [#allocation5], 0  ;;  %s34_s26 = sshll.u32 %s454_s2, 4  ;;  %s380_s27 = smov [#allocation6]   ;;  %s35_s26 = int_to_ptr.hbm [resolvable:$true] %s34_s26 }
   0x3   :  { %s36_s28 = sshll.u32 %s380_s27, 4  ;;  %s21_s8 = sshll.u32 %s453_s1, 4  ;;  %s37_s28 = int_to_ptr.vmem [resolvable:$true] %s36_s28  ;;  %s22_s8 = int_to_ptr.hbm [resolvable:$true] %s21_s8 }
   0x4   :  { %s381_s9 = smov 128   ;;  %s382_s10 = smov 8  }
   0x5   :  { %42 = dma.hbm_to_vmem [thread:$0]  %s35_s26, 2048, %s37_s28, [#allocation7], %s381_s9, %s381_s9, %s382_s10  }
   0x6   :  { %s383_s11 = smov [#allocation3]   ;;  %s49_s15 = sshll.u32 %s456_s4, 4  ;;  %s50_s15 = int_to_ptr.hbm [resolvable:$true] %s49_s15 }
   0x7   :  { %s23_s12 = sshll.u32 %s383_s11, 4  ;;  %s384_s2 = smov [#allocation8]   ;;  %s24_s12 = int_to_ptr.vmem [resolvable:$true] %s23_s12 }
   0x8   :  { %29 = dma.hbm_to_vmem [thread:$0]  %s22_s8, 2048, %s24_s12, [#allocation4], %s381_s9, %s381_s9, %s382_s10  }
   0x9   :  { %s51_s16 = sshll.u32 %s384_s2, 4  ;;  %s52_s16 = int_to_ptr.vmem [resolvable:$true] %s51_s16 }
   0xa   :  { %57 = dma.hbm_to_vmem [thread:$0]  %s50_s15, 2048, %s52_s16, [#allocation7], %s381_s9, %s381_s9, %s382_s10  }
   0xb   :  { %374 = dma.done.wait [#allocation4], 2048  }
   0xc   :  { %375 = vsyncadd [#allocation4], 4294965248 }
   0xd   :  { %376 = dma.done.wait [#allocation7], 4096  }
   0xe   :  { %377 = vsyncadd [#allocation7], 4294963200  ;;  %v101_v0 = vld [vmem:[#allocation3 + $0x78] sm:$0xff]  ;;  %v100_v1 = vld [vmem:[#allocation3 + $0x70] sm:$0xff]  ;;  %v385_v2 = vmov 0   ;;  %v80_v22 = vlaneseq  ;;  %v386_v35 = vmov 1.0  }
   0xf   :  { %102 = vmatpush.msra.mxu0 %v101_v0  ;;  %268 = vset.pattern.permute.xlu0 %v385_v2  ;;  %v99_v3 = vld [vmem:[#allocation3 + $0x68] sm:$0xff]  ;;  %v98_v4 = vld [vmem:[#allocation3 + $0x60] sm:$0xff]  ;;  %v97_v5 = vld [vmem:[#allocation3 + $0x58] sm:$0xff]  ;;  %s247_s23 = sshll.u32 %s459_s7, 4  ;;  %s248_s23 = int_to_ptr.hbm [resolvable:$true] %s247_s23 }
  0x10   :  { %v128_v6 = vld [vmem:[%s458_s6] sm:$0xff]  ;;  %v150_v7 = vld [vmem:[#allocation6 + $0x78] sm:$0xff]  ;;  %v149_v8 = vld [vmem:[#allocation6 + $0x70] sm:$0xff]  ;;  %v81_v27 = vshrl.u32 %v80_v22, 7 }
  0x11   :  { %103 = vmatpush.msra.mxu0 %v100_v1  ;;  %131 = vperm.xlu0 %268, %v128_v6   ;;  %v96_v9 = vld [vmem:[#allocation3 + $0x50] sm:$0xff]  ;;  %v148_v10 = vld [vmem:[#allocation6 + $0x68] sm:$0xff]  ;;  %v147_v12 = vld [vmem:[#allocation6 + $0x60] sm:$0xff] }
  0x12   :  { %155 = vmatpush.msra.mxu1 %v150_v7  ;;  %v95_v11 = vld [vmem:[#allocation3 + $0x48] sm:$0xff]  ;;  %v94_v13 = vld [vmem:[#allocation3 + $0x40] sm:$0xff]  ;;  %v146_v14 = vld [vmem:[#allocation6 + $0x58] sm:$0xff] }
  0x13   :  { %104 = vmatpush.msra.mxu0 %v99_v3  ;;  %v93_v15 = vld [vmem:[#allocation3 + $0x38] sm:$0xff]  ;;  %v145_v16 = vld [vmem:[#allocation6 + $0x50] sm:$0xff]  ;;  %v144_v18 = vld [vmem:[#allocation6 + $0x48] sm:$0xff] }
  0x14   :  { %156 = vmatpush.msra.mxu1 %v149_v8  ;;  %v92_v17 = vld [vmem:[#allocation3 + $0x30] sm:$0xff]  ;;  %v91_v19 = vld [vmem:[#allocation3 + $0x28] sm:$0xff]  ;;  %v143_v20 = vld [vmem:[#allocation6 + $0x40] sm:$0xff] }
  0x15   :  { %105 = vmatpush.msra.mxu0 %v98_v4  ;;  %v90_v21 = vld [vmem:[#allocation3 + $0x20] sm:$0xff]  ;;  %v142_v23 = vld [vmem:[#allocation6 + $0x38] sm:$0xff]  ;;  %v141_v25 = vld [vmem:[#allocation6 + $0x30] sm:$0xff] }
  0x16   :  { %157 = vmatpush.msra.mxu1 %v148_v10  ;;  %v89_v24 = vld [vmem:[#allocation3 + $0x18] sm:$0xff]  ;;  %v88_v26 = vld [vmem:[#allocation3 + $0x10] sm:$0xff]  ;;  %v269_v28 = vld [vmem:[%s452_s0] ss:$0 sm:$0xff] }
  0x17   :  { %106 = vmatpush.msra.mxu0 %v97_v5  ;;  %v140_v29 = vld [vmem:[#allocation6 + $0x28] sm:$0xff]  ;;  %v139_v31 = vld [vmem:[#allocation6 + $0x20] sm:$0xff]  ;;  %vm83_vm0 = vcmp.eq.s32.totalorder %v81_v27, %v269_v28  ;;  %v138_v33 = vld [vmem:[#allocation6 + $0x18] sm:$0xff] }
  0x18   :  { %158 = vmatpush.msra.mxu1 %v147_v12  ;;  %v87_v30 = vld [vmem:[#allocation3 + $0x8] sm:$0xff]  ;;  %v86_v32 = vld [vmem:[#allocation3] sm:$0xff]  ;;  %v137_v34 = vld [vmem:[#allocation6 + $0x10] sm:$0xff] }
  0x19   :  { %107 = vmatpush.msra.mxu0 %v96_v9  ;;  %v136_v36 = vld [vmem:[#allocation6 + $0x8] sm:$0xff]  ;;  %v135_v37 = vld [vmem:[#allocation6] sm:$0xff]  ;;  %v196_v38 = vld [vmem:[#allocation8 + $0x78] sm:$0xff] }
  0x1a   :  { %159 = vmatpush.msra.mxu1 %v146_v14  ;;  %v195_v39 = vld [vmem:[#allocation8 + $0x70] sm:$0xff]  ;;  %201 = vmatpush.msra.mxu2 %v196_v38  ;;  %v194_v40 = vld [vmem:[#allocation8 + $0x68] sm:$0xff]  ;;  %v193_v41 = vld [vmem:[#allocation8 + $0x60] sm:$0xff] }
  0x1b   :  { %108 = vmatpush.msra.mxu0 %v95_v11  ;;  %v192_v42 = vld [vmem:[#allocation8 + $0x58] sm:$0xff]  ;;  %v191_v43 = vld [vmem:[#allocation8 + $0x50] sm:$0xff]  ;;  %v190_v44 = vld [vmem:[#allocation8 + $0x48] sm:$0xff] }
  0x1c   :  { %160 = vmatpush.msra.mxu1 %v145_v16  ;;  %202 = vmatpush.msra.mxu2 %v195_v39  ;;  %v189_v48 = vld [vmem:[#allocation8 + $0x40] sm:$0xff]  ;;  %v188_v49 = vld [vmem:[#allocation8 + $0x38] sm:$0xff]  ;;  %v187_v50 = vld [vmem:[#allocation8 + $0x30] sm:$0xff] }
  0x1d   :  { %109 = vmatpush.msra.mxu0 %v94_v13  ;;  %v186_v51 = vld [vmem:[#allocation8 + $0x28] sm:$0xff]  ;;  %v185_v52 = vld [vmem:[#allocation8 + $0x20] sm:$0xff]  ;;  %v184_v53 = vld [vmem:[#allocation8 + $0x18] sm:$0xff] }
  0x1e   :  { %161 = vmatpush.msra.mxu1 %v144_v18  ;;  %203 = vmatpush.msra.mxu2 %v194_v40  ;;  %v183_v54 = vld [vmem:[#allocation8 + $0x10] sm:$0xff]  ;;  %v182_v55 = vld [vmem:[#allocation8 + $0x8] sm:$0xff]  ;;  %v181_v56 = vld [vmem:[#allocation8] sm:$0xff] }
  0x1f   :  { %110 = vmatpush.msra.mxu0 %v93_v15  ;;  %v270_v57 = vld [vmem:[%s455_s3] ss:$0 sm:$0xff]  ;;  %s387_s3 = smov [#allocation9]  }
  0x20   :  { %162 = vmatpush.msra.mxu1 %v143_v20  ;;  %204 = vmatpush.msra.mxu2 %v193_v41  ;;  %v271_v1 = vld [vmem:[%s457_s5] ss:$0 sm:$0xff]  ;;  %s245_s5 = sshll.u32 %s387_s3, 4  ;;  %s246_s5 = int_to_ptr.vmem [resolvable:$true] %s245_s5 }
  0x21   :  { %111 = vmatpush.msra.mxu0 %v92_v17 }
  0x22   :  { %163 = vmatpush.msra.mxu1 %v142_v23  ;;  %205 = vmatpush.msra.mxu2 %v192_v42 }
  0x23   :  { %112 = vmatpush.msra.mxu0 %v91_v19 }
  0x24   :  { %164 = vmatpush.msra.mxu1 %v141_v25  ;;  %206 = vmatpush.msra.mxu2 %v191_v43 }
  0x25   :  { %113 = vmatpush.msra.mxu0 %v90_v21 }
  0x26   :  { %165 = vmatpush.msra.mxu1 %v140_v29  ;;  %207 = vmatpush.msra.mxu2 %v190_v44 }
  0x27   :  { %114 = vmatpush.msra.mxu0 %v89_v24 }
  0x28   :  { %166 = vmatpush.msra.mxu1 %v139_v31  ;;  %208 = vmatpush.msra.mxu2 %v189_v48 }
  0x29   :  { %115 = vmatpush.msra.mxu0 %v88_v26 }
  0x2a   :  { %167 = vmatpush.msra.mxu1 %v138_v33  ;;  %209 = vmatpush.msra.mxu2 %v188_v49 }
  0x2b   :  { %116 = vmatpush.msra.mxu0 %v87_v30 }
  0x2c   :  { %168 = vmatpush.msra.mxu1 %v137_v34  ;;  %210 = vmatpush.msra.mxu2 %v187_v50 }
  0x2d   :  { %117 = vmatpush.msra.mxu0 %v86_v32 }
  0x2e   :  { %258 = vmatmul.msk.f32.vlgmr.msra.gmra.mxu0 %vm83_vm0, %v386_v35  ;;  %169 = vmatpush.msra.mxu1 %v136_v36 }
  0x2f   :  { %211 = vmatpush.msra.mxu2 %v186_v51 }
  0x30   :  { %170 = vmatpush.msra.mxu1 %v135_v37 }
  0x31   :  { %212 = vmatpush.msra.mxu2 %v185_v52 }
  0x33   :  { %213 = vmatpush.msra.mxu2 %v184_v53 }
  0x35   :  { %214 = vmatpush.msra.mxu2 %v183_v54 }
  0x37   :  { %215 = vmatpush.msra.mxu2 %v182_v55 }
  0x39   :  { %216 = vmatpush.msra.mxu2 %v181_v56 }
  0x83   :  { %v132_v45 = vpop.permute.xlu0 %131 }
  0xab   :  { %v119_v46 = vpop.f32.mrf.mxu0 }
  0xac   :  { %v134_v47 = vmul.f32 %v132_v45, %v119_v46 }
  0xae   :  { %171 = vmatmul.f32.vlgmr.msra.gmra.mxu1 %v134_v47 }
 0x12b   :  { %v172_v58 = vpop.f32.mrf.mxu1 }
 0x12c   :  { %v173_v59 = vadd.f32 %v270_v57, %v172_v58 }
 0x12e   :  { %v176_v60 = vmin.f32 %v173_v59, 0.0  ;;  %vm175_vm1 = vcmp.gt.f32.partialorder %v173_v59, 0.0 }
 0x130   :  { %v177_v61 = vmul.f32 1.442695, %v176_v60 }
 0x132   :  { %272 = vpow2.f32 %v177_v61 }
 0x138   :  { %v273_v62 = vpop.eup %272 }
 0x139   :  { %v259_v63 = vadd.f32 -1.0, %v273_v62 }
 0x13b   :  { %v180_v0 = vsel %vm175_vm1, %v173_v59, %v259_v63 }
 0x13c   :  { %217 = vmatmul.f32.vlgmr.msra.gmra.mxu2 %v180_v0 }
 0x1bf   :  { %v218_v2 = vpop.f32.mrf.mxu2 }
 0x1c0   :  { %v219_v3 = vadd.f32 %v271_v1, %v218_v2 }
 0x1c2   :  { %v221_v4 = vrot.slane %v219_v3, 4 }
 0x1c4   :  { %v222_v5 = vmax.f32 %v219_v3, %v221_v4 }
 0x1c6   :  { %v223_v6 = vrot.slane %v222_v5, 2 }
 0x1c8   :  { %v224_v7 = vmax.f32 %v222_v5, %v223_v6 }
 0x1ca   :  { %v225_v8 = vrot.slane %v224_v7, 1 }
 0x1cc   :  { %v226_v9 = vmax.f32 %v224_v7, %v225_v8 }
 0x1ce   :  { %v227_v10 = vsub.f32 %v219_v3, %v226_v9 }
 0x1d0   :  { %v228_v11 = vmul.f32 1.442695, %v227_v10 }
 0x1d2   :  { %274 = vpow2.f32 %v228_v11 }
 0x1d8   :  { %v275_v12 = vpop.eup %274 }
 0x1d9   :  { %v230_v13 = vrot.slane %v275_v12, 4 }
 0x1db   :  { %v231_v14 = vadd.f32 %v275_v12, %v230_v13 }
 0x1dd   :  { %v232_v15 = vrot.slane %v231_v14, 2 }
 0x1df   :  { %v233_v16 = vadd.f32 %v232_v15, %v231_v14 }
 0x1e1   :  { %v234_v17 = vrot.slane %v233_v16, 1 }
 0x1e3   :  { %v235_v18 = vadd.f32 %v234_v17, %v233_v16 }
 0x1e5   :  { %276 = vlog2.f32 %v235_v18 }
 0x1eb   :  { %v277_v19 = vpop.eup %276 }
 0x1ec   :  { %v237_v20 = vmul.f32 0.6931472, %v277_v19 }
 0x1ee   :  { %v238_v21 = vsub.f32 %v227_v10, %v237_v20 }
 0x1f0   :  { %239 = vst [vmem:[#allocation9] sm:$0xff] %v238_v21 }
 0x1f1   :  { %250 = dma.vmem_to_hbm [thread:$0]  %s246_s5, 128, %s248_s23, [#allocation5]  }
 0x1f2   :  { %378 = dma.done.wait [#allocation5], 128  }
 0x1f3   :  { %379 = vsyncadd [#allocation5], 4294967168 }
 0x1f4   :  { %255 = vsyncpa [#allocation4], 1 }
 0x1f5   :  { %256 = vsyncpa [#allocation7], 1 }
 0x1f6   :  { %257 = vsyncpa [#allocation5], 1 }

</bundles_post_ra>
